<compile_context>
chip_gen: v6e
topology: v6e:2x2x1
jax: 0.10.0
libtpu: 0.0.40
codegen_flags: <defaults>
</compile_context>

<pallas_src>
import jax
import jax.numpy as jnp
from jax.experimental import pallas as pl
from jax.experimental.pallas import tpu as pltpu

INPUT_SIZE = 16
HIDDEN_SIZES = [128, 64, 32]
BN_EPS = 1e-5
LANE = 128          # TPU lane width; hidden widths are zero-padded to this
MIN_TILE_B = 128
MAX_TILE_B = 2048   # fits default scoped VMEM on v5e (16 MiB) .. v7x (32 MiB)

H1, H2, H3 = HIDDEN_SIZES


def _round_up(x, m):
    return (x + m - 1) // m * m


def _pick_tile_b(batch):
    """Largest batch tile (multiple of 128) that still leaves >=2 grid steps
    when possible (v7x megacore), capped for VMEM."""
    if batch <= MIN_TILE_B:
        return MIN_TILE_B
    half = -(-batch // 2)
    return min(MAX_TILE_B, _round_up(half, MIN_TILE_B))


def _mlp_kernel(x_ref, w1_ref, w2_ref, w3_ref, w4_ref, bias_ref, o_ref):
    """Whole MLP forward for one (tile_b, INPUT_SIZE) batch tile.

    BatchNorm (eval mode) is already folded into weights/biases host-side and
    Dropout is identity, so each hidden layer is Linear -> ReLU. All hidden
    widths are padded to 128 lanes, so bias adds are full-lane.
    bias_ref: (8, 128) pack; rows 0..2 = hidden-layer biases, row 3 lane 0 = b4.
    Output is written lane-dense as a (1, tile_b) row.
    """
    h = x_ref[...]                                                 # (tile_b, 16)

    h = jnp.maximum(
        jnp.dot(h, w1_ref[...], preferred_element_type=jnp.float32)
        + bias_ref[0:1, :], 0.0)                                   # (tile_b, 128)
    h = jnp.maximum(
        jnp.dot(h, w2_ref[...], preferred_element_type=jnp.float32)
        + bias_ref[1:2, :], 0.0)                                   # (tile_b, 128)
    h = jnp.maximum(
        jnp.dot(h, w3_ref[...], preferred_element_type=jnp.float32)
        + bias_ref[2:3, :], 0.0)                                   # (tile_b, 128)

    # Final Linear (true width 32, padded to K=128) producing a lane-dense row:
    #   (1, 128) @ (128, tile_b) -> (1, tile_b)
    z = jnp.dot(w4_ref[...], h.T, preferred_element_type=jnp.float32)
    z = z + bias_ref[3:4, 0:1]
    # Exact sigmoid (1e-5 tolerance); exp overflow saturates to the right limit.
    o_ref[...] = 1.0 / (1.0 + jnp.exp(-z))


def feedforward_nn(x, ws, bias_pack):
    """x: (B, INPUT_SIZE) f32. ws: folded+padded [W1(16,128), W2(128,128),
    W3(128,128), W4row(1,128)]. bias_pack: (8,128) f32."""
    B = x.shape[0]
    tile_b = _pick_tile_b(B)
    num_tiles = pl.cdiv(B, tile_b)
    Bp = num_tiles * tile_b

    const = lambda i: (0, 0)  # weights/bias: same block every step (VMEM-resident)

    flops = 2 * Bp * (INPUT_SIZE * LANE + LANE * LANE + LANE * LANE + LANE)
    bytes_accessed = (B * INPUT_SIZE + Bp) * 4 \
        + sum(int(w.size) for w in ws) * 4 + 8 * LANE * 4

    out = pl.pallas_call(
        _mlp_kernel,
        out_shape=jax.ShapeDtypeStruct((1, Bp), jnp.float32),
        grid_spec=pltpu.PrefetchScalarGridSpec(
            num_scalar_prefetch=0,
            grid=(num_tiles,),
            in_specs=[
                pl.BlockSpec((tile_b, INPUT_SIZE), lambda i: (i, 0)),  # x tile
                pl.BlockSpec(ws[0].shape, const),   # W1 (16, 128)
                pl.BlockSpec(ws[1].shape, const),   # W2 (128, 128)
                pl.BlockSpec(ws[2].shape, const),   # W3 (128, 128)
                pl.BlockSpec(ws[3].shape, const),   # W4 row (1, 128)
                pl.BlockSpec((8, LANE), const),     # packed biases
            ],
            out_specs=pl.BlockSpec((1, tile_b), lambda i: (0, i)),     # lane-dense
        ),
        compiler_params=pltpu.CompilerParams(
            dimension_semantics=("parallel",)),
        cost_estimate=pl.CostEstimate(
            flops=flops, transcendentals=Bp, bytes_accessed=bytes_accessed),
    )(x, ws[0], ws[1], ws[2], ws[3], bias_pack)

    return out[0, :B].reshape(B, 1)


def init_params(key, input_size, hidden_sizes):
    """Deterministic init mirroring PyTorch layer shapes (torch-like params).

    Linear weights ~ U(-1/sqrt(fan_in), 1/sqrt(fan_in)), stored as (D_in, D_out).
    BN: gamma=1, beta=0, running stats deterministic perturbations.
    """
    params = []
    prev = input_size
    keys = jax.random.split(key, len(hidden_sizes) * 2 + 2)
    ki = 0
    for h in hidden_sizes:
        bound = 1.0 / (prev ** 0.5)
        w = jax.random.uniform(keys[ki], (prev, h), jnp.float32, -bound, bound); ki += 1
        b = jax.random.uniform(keys[ki], (1, h), jnp.float32, -bound, bound); ki += 1
        gamma = jnp.ones((1, h), jnp.float32)
        beta = jnp.zeros((1, h), jnp.float32)
        run_mean = 0.01 * jnp.arange(h, dtype=jnp.float32).reshape(1, h)
        run_var = jnp.ones((1, h), jnp.float32) + 0.05 * jnp.cos(
            jnp.arange(h, dtype=jnp.float32)).reshape(1, h)
        params.extend([w, b, gamma, beta, run_mean, run_var])
        prev = h
    bound = 1.0 / (prev ** 0.5)
    w_out = jax.random.uniform(keys[ki], (prev, 1), jnp.float32, -bound, bound); ki += 1
    b_out = jax.random.uniform(keys[ki], (1, 1), jnp.float32, -bound, bound); ki += 1
    params.extend([w_out, b_out])
    return params


def fold_params(params, eps=BN_EPS):
    """Fold each eval-mode BatchNorm (which follows a ReLU) into the NEXT
    Linear layer. Exact for eval-mode BN + identity Dropout:
        a = relu(h@W_k + b_k) * s_k + t_k       with s = g*rsqrt(v+eps),
        a @ W_{k+1} + b_{k+1}                        t = beta - m*s
          = relu(h@W_k + b_k) @ (s_k^T * W_{k+1}) + (t_k @ W_{k+1} + b_{k+1})
    Returns ([W1',W2',W3',W4'], [b1',b2',b3',b4']).
    """
    ws, bs = [], []
    s_prev, t_prev = None, None
    idx = 0
    for _ in HIDDEN_SIZES:
        w, b, g, be, m, v = params[idx:idx + 6]
        idx += 6
        if s_prev is not None:
            b = b + t_prev @ w          # use original w for the bias term
            w = s_prev.T * w            # scale rows of w by previous BN scale
        ws.append(w)
        bs.append(b)
        s = g * jax.lax.rsqrt(v + eps)
        t = be - m * s
        s_prev, t_prev = s, t
    w_out, b_out = params[idx], params[idx + 1]
    b_out = b_out + t_prev @ w_out
    w_out = s_prev.T * w_out
    ws.append(w_out)
    bs.append(b_out)
    return ws, bs


def pad_folded(ws, bs):
    """Zero-pad hidden widths to LANE lanes and pack biases into one (8,128).

    Exact: padded output lanes have zero weight columns and zero bias, so they
    are 0 after ReLU and hit zero rows of the next weight matrix.
    """
    w1, w2, w3, w4 = ws
    W1 = jnp.zeros((w1.shape[0], LANE), jnp.float32).at[:, :w1.shape[1]].set(w1)
    W2 = jnp.zeros((LANE, LANE), jnp.float32).at[:w2.shape[0], :w2.shape[1]].set(w2)
    W3 = jnp.zeros((LANE, LANE), jnp.float32).at[:w3.shape[0], :w3.shape[1]].set(w3)
    W4row = jnp.zeros((1, LANE), jnp.float32).at[:, :w4.shape[0]].set(w4.T)
    bias = jnp.zeros((8, LANE), jnp.float32)
    for i, b in enumerate(bs):
        bias = bias.at[i, :b.shape[1]].set(b[0])
    return [W1, W2, W3, W4row], bias


def reference_forward(x, params):
    """Pure-JAX reference (unfolded, matches the PyTorch module in eval mode)."""
    h = x
    idx = 0
    for _ in HIDDEN_SIZES:
        w, b, g, be, m, v = params[idx:idx + 6]
        idx += 6
        z = h @ w + b
        z = jnp.maximum(z, 0.0)
        z = (z - m) / jnp.sqrt(v + BN_EPS) * g + be
        h = z  # Dropout: identity in eval mode
    w, b = params[idx], params[idx + 1]
    return jax.nn.sigmoid(h @ w + b)


if __name__ == "__main__":
    key = jax.random.PRNGKey(0)
    k_x, k_p = jax.random.split(key)
    params = init_params(k_p, INPUT_SIZE, HIDDEN_SIZES)

    ws, bs = fold_params(params)
    ws_pad, bias_pack = pad_folded(ws, bs)

    # B=512: even split into 2 grid steps of 256 rows.
    # B=200: exercises the ragged final block (no host-side padding copy).
    for B in (512, 200):
        x = jax.random.normal(jax.random.fold_in(k_x, B), (B, INPUT_SIZE),
                              jnp.float32)
        out = jax.block_until_ready(feedforward_nn(x, ws_pad, bias_pack))
        ref = reference_forward(x, params)
        assert out.shape == (B, 1)
        assert jnp.allclose(out, ref, atol=1e-5, rtol=1e-5), (B, out[:4], ref[:4])
    # TODO(synk): training-mode BatchNorm (batch statistics) and active Dropout
    # are intentionally not implemented; this kernel matches eval() semantics.
    print("KERNEL_OK")
</pallas_src>

<mosaic_0001>
module attributes {stable_mosaic.version = 11 : i64} {
  func.func @_mlp_kernel(%arg0: i32, %arg1: memref<256x16xf32, #tpu.memory_space<vmem>>, %arg2: memref<16x128xf32, #tpu.memory_space<vmem>>, %arg3: memref<128x128xf32, #tpu.memory_space<vmem>>, %arg4: memref<128x128xf32, #tpu.memory_space<vmem>>, %arg5: memref<1x128xf32, #tpu.memory_space<vmem>>, %arg6: memref<8x128xf32, #tpu.memory_space<vmem>>, %arg7: memref<1x256xf32, #tpu.memory_space<vmem>>) attributes {dimension_semantics = [#tpu.dimension_semantics<parallel>], iteration_bounds = array<i64: 2>, scalar_prefetch = 0 : i64, scratch_operands = 0 : i64, tpu.core_type = #tpu.core_type<tc>, window_params = [{transform_indices = @transform_0, window_bounds = array<i64: 256, 16>}, {pipeline_mode = #tpu.pipeline_mode<synchronous>, transform_indices = @transform_1, window_bounds = array<i64: 16, 128>}, {pipeline_mode = #tpu.pipeline_mode<synchronous>, transform_indices = @transform_2, window_bounds = array<i64: 128, 128>}, {pipeline_mode = #tpu.pipeline_mode<synchronous>, transform_indices = @transform_3, window_bounds = array<i64: 128, 128>}, {pipeline_mode = #tpu.pipeline_mode<synchronous>, transform_indices = @transform_4, window_bounds = array<i64: 1, 128>}, {pipeline_mode = #tpu.pipeline_mode<synchronous>, transform_indices = @transform_5, window_bounds = array<i64: 8, 128>}, {transform_indices = @transform_6, window_bounds = array<i64: 1, 256>}]} {
    %c0 = arith.constant 0 : index
    %c0_0 = arith.constant 0 : index
    %0 = vector.load %arg1[%c0, %c0_0] : memref<256x16xf32, #tpu.memory_space<vmem>>, vector<256x16xf32>
    %c0_1 = arith.constant 0 : index
    %c0_2 = arith.constant 0 : index
    %1 = vector.load %arg2[%c0_1, %c0_2] : memref<16x128xf32, #tpu.memory_space<vmem>>, vector<16x128xf32>
    %cst = arith.constant dense<0.000000e+00> : vector<256x128xf32>
    %2 = tpu.matmul %0, %1, %cst {dimension_numbers = #tpu.dot_dimension_numbers<[1], [0], [0], [1], [0, 0, 1, 1], [], []>} : vector<256x16xf32>, vector<16x128xf32>, vector<256x128xf32> -> vector<256x128xf32>
    %c0_3 = arith.constant 0 : index
    %c0_4 = arith.constant 0 : index
    %3 = vector.load %arg6[%c0_3, %c0_4] : memref<8x128xf32, #tpu.memory_space<vmem>>, vector<1x128xf32>
    %4 = vector.broadcast %3 : vector<1x128xf32> to vector<256x128xf32>
    %5 = arith.addf %2, %4 : vector<256x128xf32>
    %cst_5 = arith.constant 0.000000e+00 : f32
    %6 = vector.broadcast %cst_5 : f32 to vector<256x128xf32>
    %7 = arith.maximumf %5, %6 : vector<256x128xf32>
    %c0_6 = arith.constant 0 : index
    %c0_7 = arith.constant 0 : index
    %8 = vector.load %arg3[%c0_6, %c0_7] : memref<128x128xf32, #tpu.memory_space<vmem>>, vector<128x128xf32>
    %cst_8 = arith.constant dense<0.000000e+00> : vector<256x128xf32>
    %9 = tpu.matmul %7, %8, %cst_8 {dimension_numbers = #tpu.dot_dimension_numbers<[1], [0], [0], [1], [0, 0, 1, 1], [], []>} : vector<256x128xf32>, vector<128x128xf32>, vector<256x128xf32> -> vector<256x128xf32>
    %c1 = arith.constant 1 : index
    %c0_9 = arith.constant 0 : index
    %10 = vector.load %arg6[%c1, %c0_9] : memref<8x128xf32, #tpu.memory_space<vmem>>, vector<1x128xf32>
    %11 = vector.broadcast %10 : vector<1x128xf32> to vector<256x128xf32>
    %12 = arith.addf %9, %11 : vector<256x128xf32>
    %cst_10 = arith.constant 0.000000e+00 : f32
    %13 = vector.broadcast %cst_10 : f32 to vector<256x128xf32>
    %14 = arith.maximumf %12, %13 : vector<256x128xf32>
    %c0_11 = arith.constant 0 : index
    %c0_12 = arith.constant 0 : index
    %15 = vector.load %arg4[%c0_11, %c0_12] : memref<128x128xf32, #tpu.memory_space<vmem>>, vector<128x128xf32>
    %cst_13 = arith.constant dense<0.000000e+00> : vector<256x128xf32>
    %16 = tpu.matmul %14, %15, %cst_13 {dimension_numbers = #tpu.dot_dimension_numbers<[1], [0], [0], [1], [0, 0, 1, 1], [], []>} : vector<256x128xf32>, vector<128x128xf32>, vector<256x128xf32> -> vector<256x128xf32>
    %c2 = arith.constant 2 : index
    %c0_14 = arith.constant 0 : index
    %17 = vector.load %arg6[%c2, %c0_14] : memref<8x128xf32, #tpu.memory_space<vmem>>, vector<1x128xf32>
    %18 = vector.broadcast %17 : vector<1x128xf32> to vector<256x128xf32>
    %19 = arith.addf %16, %18 : vector<256x128xf32>
    %cst_15 = arith.constant 0.000000e+00 : f32
    %20 = vector.broadcast %cst_15 : f32 to vector<256x128xf32>
    %21 = arith.maximumf %19, %20 : vector<256x128xf32>
    %c0_16 = arith.constant 0 : index
    %c0_17 = arith.constant 0 : index
    %22 = vector.load %arg5[%c0_16, %c0_17] : memref<1x128xf32, #tpu.memory_space<vmem>>, vector<1x128xf32>
    %23 = tpu.transpose %21, [1, 0] : vector<256x128xf32> -> vector<128x256xf32>
    %cst_18 = arith.constant dense<0.000000e+00> : vector<1x256xf32>
    %24 = tpu.matmul %22, %23, %cst_18 {dimension_numbers = #tpu.dot_dimension_numbers<[1], [0], [0], [1], [0, 0, 1, 1], [], []>} : vector<1x128xf32>, vector<128x256xf32>, vector<1x256xf32> -> vector<1x256xf32>
    %c3 = arith.constant 3 : index
    %c0_19 = arith.constant 0 : index
    %25 = vector.load %arg6[%c3, %c0_19] : memref<8x128xf32, #tpu.memory_space<vmem>>, vector<1x1xf32>
    %26 = vector.broadcast %25 : vector<1x1xf32> to vector<1x256xf32>
    %27 = arith.addf %24, %26 : vector<1x256xf32>
    %cst_20 = arith.constant 0.000000e+00 : f32
    %28 = vector.broadcast %cst_20 : f32 to vector<1x256xf32>
    %29 = arith.subf %28, %27 : vector<1x256xf32>
    %30 = math.exp %29 : vector<1x256xf32>
    %cst_21 = arith.constant 1.000000e+00 : f32
    %31 = vector.broadcast %cst_21 : f32 to vector<1x256xf32>
    %32 = arith.addf %31, %30 : vector<1x256xf32>
    %cst_22 = arith.constant 1.000000e+00 : f32
    %33 = vector.broadcast %cst_22 : f32 to vector<1x256xf32>
    %34 = arith.divf %33, %32 : vector<1x256xf32>
    %c0_23 = arith.constant 0 : index
    %c0_24 = arith.constant 0 : index
    %35 = vector.load %arg7[%c0_23, %c0_24] : memref<1x256xf32, #tpu.memory_space<vmem>>, vector<1x256xf32>
    tpu.vector_store %arg7[%c0_23, %c0_24], %34 {strides = array<i32>} : memref<1x256xf32, #tpu.memory_space<vmem>>, vector<1x256xf32>,
    return
  }
  func.func @transform_0(%arg0: i32) -> (i32, i32) {
    %c0_i32 = arith.constant 0 : i32
    %c0_i32_0 = arith.constant 0 : i32
    return %arg0, %c0_i32 : i32, i32
  }
  func.func @transform_1(%arg0: i32) -> (i32, i32) {
    %c0_i32 = arith.constant 0 : i32
    %c0_i32_0 = arith.constant 0 : i32
    %c0_i32_1 = arith.constant 0 : i32
    return %c0_i32, %c0_i32_0 : i32, i32
  }
  func.func @transform_2(%arg0: i32) -> (i32, i32) {
    %c0_i32 = arith.constant 0 : i32
    %c0_i32_0 = arith.constant 0 : i32
    %c0_i32_1 = arith.constant 0 : i32
    return %c0_i32, %c0_i32_0 : i32, i32
  }
  func.func @transform_3(%arg0: i32) -> (i32, i32) {
    %c0_i32 = arith.constant 0 : i32
    %c0_i32_0 = arith.constant 0 : i32
    %c0_i32_1 = arith.constant 0 : i32
    return %c0_i32, %c0_i32_0 : i32, i32
  }
  func.func @transform_4(%arg0: i32) -> (i32, i32) {
    %c0_i32 = arith.constant 0 : i32
    %c0_i32_0 = arith.constant 0 : i32
    %c0_i32_1 = arith.constant 0 : i32
    return %c0_i32, %c0_i32_0 : i32, i32
  }
  func.func @transform_5(%arg0: i32) -> (i32, i32) {
    %c0_i32 = arith.constant 0 : i32
    %c0_i32_0 = arith.constant 0 : i32
    %c0_i32_1 = arith.constant 0 : i32
    return %c0_i32, %c0_i32_0 : i32, i32
  }
  func.func @transform_6(%arg0: i32) -> (i32, i32) {
    %c0_i32 = arith.constant 0 : i32
    %c0_i32_0 = arith.constant 0 : i32
    return %c0_i32, %arg0 : i32, i32
  }
}

</mosaic_0001>

<bundles_post_ra>
// kernel: tpu_custom_call.1
= control target key start
LH: loop header
LB: loop body
LE: loop exit
PB: predicated region body
PF: predicated region fallthrough
CT: control target
= control target key end

     0   :  { %11 = vsyncpa [#allocation3], 0  ;;  %s2396_s0 = inlined_call_operand.vmem [shape: f32[512,16], index: 0, kind: input, shape index: {}]   ;;  %s2397_s1 = inlined_call_operand.vmem [shape: f32[16,128], index: 1, kind: input, shape index: {}]   ;;  %s2398_s2 = inlined_call_operand.vmem [shape: f32[128,128], index: 2, kind: input, shape index: {}]   ;;  %s2399_s3 = inlined_call_operand.vmem [shape: f32[128,128], index: 3, kind: input, shape index: {}]   ;;  %s2400_s4 = inlined_call_operand.vmem [shape: f32[1,128], index: 4, kind: input, shape index: {}]   ;;  %s2401_s5 = inlined_call_operand.vmem [shape: f32[8,128], index: 5, kind: input, shape index: {}]   ;;  %s2402_s6 = inlined_call_operand.hbm [shape: f32[1,512], index: 6, kind: output, shape index: {}]  }
   0x1   :  { %13 = vsyncpa [#allocation3 + $0x1], 0  ;;  %s1967_s21 = smov 0   ;;  %s1969_s22 = smov 0  }
   0x2   :  { %s1971_s23 = smov 0   ;;  %s1973_s24 = smov 0  }
   0x3 LB: > { %s1388_s25 = sadd.s32 4294967295, %s1927_s24   ;;  %s1389_s26 = sadd.s32 4294967294, %s1927_s24   ;;  %s1927_s24 = sphi %s1973_s24, %s2408_s24   ;;  %s1923_s23 = sphi %s1971_s23, %s2407_s23   ;;  %s1919_s22 = sphi %s1969_s22, %s2406_s22   ;;  %s1915_s21 = sphi %s1967_s21, %s2405_s21  }
   0x4   : > { %s1990_s27 = sadd.s32 1, %s1927_s24   ;;  %s157_s28 = sadd.s32 1, %s1923_s23 }
   0x5   : > { %s154_s29 = ssub.s32 %s1927_s24, %s1990_s27  ;;  %p167_p0 = scmp.ne.s32.totalorder %s1923_s23, %s1919_s22 }
   0x6   : > { %p155_p1 = scmp.eq.s32.totalorder %s154_s29, 0  ;;  %p168_p2 = scmp.eq.s32.totalorder %s1388_s25, 1 }
   0x7   : > { %p173_p3 = scmp.ne.s32.totalorder %s1919_s22, %s1915_s21  ;;  %p174_p4 = scmp.eq.s32.totalorder %s1389_s26, 1 }
   0x8   : > { %s2000_s30 = scalar_select %p155_p1, %s1923_s23, %s157_s28  }
   0x9   : > { %p2002_p5 = por %p168_p2, %p167_p0  ;;  %p2006_p6 = por %p174_p4, %p173_p3 }
   0xa   : > { %p1392_p7 = scmp.ge.s32.totalorder %s1927_s24, 1  ;;  %p216_p8 = scmp.lt.s32.totalorder %s1927_s24, 3 }
   0xc   : > { %p217_p9 = pnand %p1392_p7, %p216_p8 }
   0xd   : > { %s2018_s13 = sshll.u32 (!%p217_p9), %s1388_s25, 5  ;;  %s243_s18 = sand.u32 (!%p217_p9), 1, %s1919_s22  }
   0xe   : > { %220 = sbr.rel (%p217_p9) target bundleno = 996 (0x3e4), region = 44  ;;  %p247_p10 = scmp.lt.s32.totalorder (!%p217_p9), %s2018_s13, 63 }
   0xf   : > { %s1393_s19 = sshll.u32 (!%p217_p9), %s243_s18, 1  ;;  %s1328_s9 = scalar_lea.hbm (!%p217_p9), %s2402_s6, %s2018_s13 }
  0x10   : > { %s245_s25 = scalar_lea.vmem (!%p217_p9), [#allocation2], %s1393_s19  ;;  %s1316_s10 = scalar_lea.sflag (!%p217_p9), [#allocation3], %s243_s18 }
  0x11   : > { %s1330_s26 = sshll.u32 (!%p217_p9), %s245_s25, 4  ;;  %s1931_s12 = smov (!%p217_p9), [#allocation2]   ;;  %s1331_s26 = int_to_ptr.vmem [resolvable:$true] %s1330_s26 }
  0x12   : > { %s1867_s11 = scalar_lea.vmem (!%p217_p9), %s1331_s26, 32  ;;  %s1871_s14 = sshll.u32 (!%p217_p9), %s1931_s12, 4  ;;  %s1872_s14 = int_to_ptr.vmem [resolvable:$false] %s1871_s14 }
  0x13   : > { %v286_v0 = vld [vmem:[%s2397_s1 + $0x8] sm:$0xff]  ;;  %v285_v1 = vld [vmem:[%s2397_s1] sm:$0xff]  ;;  %v661_v2 = vld [vmem:[%s2398_s2 + $0x78] sm:$0xff]  ;;  %s248_s16 = scalar_select %p247_p10, %s2018_s13, 63  ;;  %vm292_vm0 = vcmask 130048  }
  0x14   : > { %1601 = vmatprep.subr.mxu0 %v286_v0  ;;  %1813 = vmatprep.subr.mxu1 %v286_v0  ;;  %v660_v11 = vld [vmem:[%s2398_s2 + $0x70] sm:$0xff]  ;;  %v659_v16 = vld [vmem:[%s2398_s2 + $0x68] sm:$0xff]  ;;  %v658_v18 = vld [vmem:[%s2398_s2 + $0x60] sm:$0xff]  ;;  %p1868_p11 = scmp.ne.s32.totalorder %s1331_s26, %s1867_s11  ;;  %s1873_s15 = scalar_lea.vmem %s1872_s14, 64 }
  0x15   : > { %1602 = vmatpush3.msra.mxu0 %v286_v0  ;;  %1815 = vmatpush3.msra.mxu1 %v286_v0  ;;  %s1395_s17 = sshll.u32 %s248_s16, 3  ;;  %v657_v22 = vld [vmem:[%s2398_s2 + $0x58] sm:$0xff]  ;;  %v656_v27 = vld [vmem:[%s2398_s2 + $0x50] sm:$0xff]  ;;  %v655_v29 = vld [vmem:[%s2398_s2 + $0x48] sm:$0xff]  ;;  %p1874_p0 = scmp.lt.s32.totalorder %s1331_s26, %s1872_s14 }
  0x16   : > { %1603 = vmatprep.subr.mxu0 %v285_v1  ;;  %1814 = vmatprep.subr.mxu1 %v285_v1  ;;  %s2028_s20 = scalar_lea.vmem %s2396_s0, %s1395_s17  ;;  %v654_v33 = vld [vmem:[%s2398_s2 + $0x40] sm:$0xff]  ;;  %v653_v38 = vld [vmem:[%s2398_s2 + $0x38] sm:$0xff]  ;;  %v652_v40 = vld [vmem:[%s2398_s2 + $0x30] sm:$0xff]  ;;  %p1869_p12 = pnand %p1868_p11, %p2002_p5 }
  0x17   : > { %1604 = vmatpush3.msra.mxu0 %v285_v1  ;;  %1816 = vmatpush3.msra.mxu1 %v285_v1  ;;  %v253_v3 = vld [vmem:[%s2028_s20] sm:$0xff]  ;;  %v254_v4 = vld [vmem:[%s2028_s20 + $0x8] sm:$0xff]  ;;  %v255_v5 = vld [vmem:[%s2028_s20 + $0x10] sm:$0xff]  ;;  %p1875_p1 = scmp.lt.s32.totalorder %s1873_s15, %s1867_s11 }
  0x18   : > { %1653 = vmatprep.subr.mxu1 %v661_v2  ;;  %1605 = vmatprep.mubr.msk.f32.mxu0 %vm292_vm0, %v253_v3  ;;  %v256_v6 = vld [vmem:[%s2028_s20 + $0x18] sm:$0xff]  ;;  %v257_v7 = vld [vmem:[%s2028_s20 + $0x20] sm:$0xff]  ;;  %v270_v9 = vld [vmem:[%s2028_s20 + $0x88] sm:$0xff]  ;;  %p1870_p13 = pneg %p1869_p12 }
  0x19   : > { %1606 = vmatmul.mubr.msk.f32.vlgmr.msra.gmra.mxu0 %vm292_vm0, %v254_v4  ;;  %v269_v8 = vld [vmem:[%s2028_s20 + $0x80] sm:$0xff]  ;;  %v271_v10 = vld [vmem:[%s2028_s20 + $0x90] sm:$0xff]  ;;  %v258_v12 = vld [vmem:[%s2028_s20 + $0x28] sm:$0xff]  ;;  %p1876_p2 = por %p1875_p1, %p1874_p0 }
  0x1a   : > { %1608 = vmatprep.mubr.msk.f32.mxu0 %vm292_vm0, %v255_v5  ;;  %1629 = vmatprep.mubr.msk.f32.mxu1 %vm292_vm0, %v269_v8  ;;  %v259_v13 = vld [vmem:[%s2028_s20 + $0x30] sm:$0xff]  ;;  %v272_v14 = vld [vmem:[%s2028_s20 + $0x98] sm:$0xff]  ;;  %v273_v15 = vld [vmem:[%s2028_s20 + $0xa0] sm:$0xff] }
  0x1b   : > { %1630 = vmatmul.mubr.msk.f32.vlgmr.msra.gmra.mxu1 %vm292_vm0, %v270_v9  ;;  %v260_v17 = vld [vmem:[%s2028_s20 + $0x38] sm:$0xff]  ;;  %v261_v19 = vld [vmem:[%s2028_s20 + $0x40] sm:$0xff]  ;;  %v274_v20 = vld [vmem:[%s2028_s20 + $0xa8] sm:$0xff]  ;;  %p1877_p3 = pnand %p1876_p2, %p1870_p13 }
  0x1c   : > { %1632 = vmatprep.mubr.msk.f32.mxu1 %vm292_vm0, %v271_v10  ;;  %1654 = vmatpush3.msra.mxu1 %v661_v2  ;;  %v275_v21 = vld [vmem:[%s2028_s20 + $0xb0] sm:$0xff]  ;;  %v262_v23 = vld [vmem:[%s2028_s20 + $0x48] sm:$0xff]  ;;  %v276_v25 = vld [vmem:[%s2028_s20 + $0xb8] sm:$0xff] }
  0x1d   : > { %1609 = vmatmul.mubr.msk.f32.gmra.mxu0 %vm292_vm0, %v256_v6  ;;  %1655 = vmatprep.subr.mxu1 %v660_v11  ;;  %v263_v24 = vld [vmem:[%s2028_s20 + $0x50] sm:$0xff]  ;;  %v277_v26 = vld [vmem:[%s2028_s20 + $0xc0] sm:$0xff]  ;;  %v264_v28 = vld [vmem:[%s2028_s20 + $0x58] sm:$0xff] }
  0x1e   : > { %1611 = vmatprep.mubr.msk.f32.mxu0 %vm292_vm0, %v257_v7  ;;  %1656 = vmatpush3.msra.mxu1 %v660_v11  ;;  %v265_v30 = vld [vmem:[%s2028_s20 + $0x60] sm:$0xff]  ;;  %v278_v31 = vld [vmem:[%s2028_s20 + $0xc8] sm:$0xff]  ;;  %v279_v32 = vld [vmem:[%s2028_s20 + $0xd0] sm:$0xff] }
  0x1f   : > { %1633 = vmatmul.mubr.msk.f32.gmra.mxu1 %vm292_vm0, %v272_v14  ;;  %1657 = vmatprep.subr.mxu1 %v659_v16  ;;  %v266_v34 = vld [vmem:[%s2028_s20 + $0x68] sm:$0xff]  ;;  %v267_v35 = vld [vmem:[%s2028_s20 + $0x70] sm:$0xff]  ;;  %v280_v36 = vld [vmem:[%s2028_s20 + $0xd8] sm:$0xff] }
  0x20   : > { %1635 = vmatprep.mubr.msk.f32.mxu1 %vm292_vm0, %v273_v15  ;;  %1658 = vmatpush3.msra.mxu1 %v659_v16  ;;  %v281_v37 = vld [vmem:[%s2028_s20 + $0xe0] sm:$0xff]  ;;  %v268_v39 = vld [vmem:[%s2028_s20 + $0x78] sm:$0xff]  ;;  %v282_v41 = vld [vmem:[%s2028_s20 + $0xe8] sm:$0xff] }
  0x21   : > { %1612 = vmatmul.mubr.msk.f32.gmra.mxu0 %vm292_vm0, %v258_v12  ;;  %1659 = vmatprep.subr.mxu1 %v658_v18  ;;  %v283_v42 = vld [vmem:[%s2028_s20 + $0xf0] sm:$0xff]  ;;  %v651_v43 = vld [vmem:[%s2398_s2 + $0x28] sm:$0xff]  ;;  %v284_v44 = vld [vmem:[%s2028_s20 + $0xf8] sm:$0xff] }
  0x22   : > { %1614 = vmatprep.mubr.msk.f32.mxu0 %vm292_vm0, %v259_v13  ;;  %1660 = vmatpush3.msra.mxu1 %v658_v18  ;;  %v650_v45 = vld [vmem:[%s2398_s2 + $0x20] sm:$0xff]  ;;  %v649_v46 = vld [vmem:[%s2398_s2 + $0x18] sm:$0xff]  ;;  %v648_v47 = vld [vmem:[%s2398_s2 + $0x10] sm:$0xff] }
  0x23   : > { %1636 = vmatmul.mubr.msk.f32.gmra.mxu1 %vm292_vm0, %v274_v20  ;;  %1661 = vmatprep.subr.mxu1 %v657_v22  ;;  %v647_v48 = vld [vmem:[%s2398_s2 + $0x8] sm:$0xff]  ;;  %v646_v49 = vld [vmem:[%s2398_s2] sm:$0xff]  ;;  %v939_v50 = vld [vmem:[%s2399_s3 + $0x78] sm:$0xff] }
  0x24   : > { %1638 = vmatprep.mubr.msk.f32.mxu1 %vm292_vm0, %v275_v21  ;;  %1662 = vmatpush3.msra.mxu1 %v657_v22  ;;  %v938_v51 = vld [vmem:[%s2399_s3 + $0x70] sm:$0xff]  ;;  %v937_v52 = vld [vmem:[%s2399_s3 + $0x68] sm:$0xff]  ;;  %v936_v53 = vld [vmem:[%s2399_s3 + $0x60] sm:$0xff] }
  0x25   : > { %1615 = vmatmul.mubr.msk.f32.gmra.mxu0 %vm292_vm0, %v260_v17  ;;  %1663 = vmatprep.subr.mxu1 %v656_v27  ;;  %v935_v54 = vld [vmem:[%s2399_s3 + $0x58] sm:$0xff]  ;;  %v934_v55 = vld [vmem:[%s2399_s3 + $0x50] sm:$0xff]  ;;  %v933_v56 = vld [vmem:[%s2399_s3 + $0x48] sm:$0xff] }
  0x26   : > { %1617 = vmatprep.mubr.msk.f32.mxu0 %vm292_vm0, %v261_v19  ;;  %1664 = vmatpush3.msra.mxu1 %v656_v27  ;;  %v932_v57 = vld [vmem:[%s2399_s3 + $0x40] sm:$0xff]  ;;  %v931_v58 = vld [vmem:[%s2399_s3 + $0x38] sm:$0xff]  ;;  %v930_v59 = vld [vmem:[%s2399_s3 + $0x30] sm:$0xff] }
  0x27   : > { %1639 = vmatmul.mubr.msk.f32.gmra.mxu1 %vm292_vm0, %v276_v25  ;;  %1665 = vmatprep.subr.mxu1 %v655_v29  ;;  %v929_v60 = vld [vmem:[%s2399_s3 + $0x28] sm:$0xff]  ;;  %v928_v61 = vld [vmem:[%s2399_s3 + $0x20] sm:$0xff] }
  0x28   : > { %1641 = vmatprep.mubr.msk.f32.mxu1 %vm292_vm0, %v277_v26  ;;  %1666 = vmatpush3.msra.mxu1 %v655_v29  ;;  %v2178_v62 = vld [vmem:[%s2401_s5] ss:$0 sm:$0xff] }
  0x29   : > { %1618 = vmatmul.mubr.msk.f32.gmra.mxu0 %vm292_vm0, %v262_v23  ;;  %1667 = vmatprep.subr.mxu1 %v654_v33 }
  0x2a   : > { %1620 = vmatprep.mubr.msk.f32.mxu0 %vm292_vm0, %v263_v24  ;;  %1668 = vmatpush3.msra.mxu1 %v654_v33 }
  0x2b   : > { %1642 = vmatmul.mubr.msk.f32.gmra.mxu1 %vm292_vm0, %v278_v31  ;;  %1669 = vmatprep.subr.mxu1 %v653_v38 }
  0x2c   : > { %1644 = vmatprep.mubr.msk.f32.mxu1 %vm292_vm0, %v279_v32  ;;  %1670 = vmatpush3.msra.mxu1 %v653_v38 }
  0x2d   : > { %1621 = vmatmul.mubr.msk.f32.gmra.mxu0 %vm292_vm0, %v264_v28  ;;  %1671 = vmatprep.subr.mxu1 %v652_v40 }
  0x2e   : > { %1623 = vmatprep.mubr.msk.f32.mxu0 %vm292_vm0, %v265_v30  ;;  %1672 = vmatpush3.msra.mxu1 %v652_v40 }
  0x2f   : > { %1645 = vmatmul.mubr.msk.f32.gmra.mxu1 %vm292_vm0, %v280_v36  ;;  %1673 = vmatprep.subr.mxu1 %v651_v43 }
  0x30   : > { %1647 = vmatprep.mubr.msk.f32.mxu1 %vm292_vm0, %v281_v37  ;;  %1674 = vmatpush3.msra.mxu1 %v651_v43 }
  0x31   : > { %1624 = vmatmul.mubr.msk.f32.gmra.mxu0 %vm292_vm0, %v266_v34  ;;  %1675 = vmatprep.subr.mxu1 %v650_v45 }
  0x32   : > { %1626 = vmatprep.mubr.msk.f32.mxu0 %vm292_vm0, %v267_v35  ;;  %1676 = vmatpush3.msra.mxu1 %v650_v45 }
  0x33   : > { %1648 = vmatmul.mubr.msk.f32.gmra.mxu1 %vm292_vm0, %v282_v41  ;;  %1677 = vmatprep.subr.mxu1 %v649_v46 }
  0x34   : > { %1650 = vmatprep.mubr.msk.f32.mxu1 %vm292_vm0, %v283_v42  ;;  %1678 = vmatpush3.msra.mxu1 %v649_v46 }
  0x35   : > { %1627 = vmatmul.mubr.msk.f32.gmra.mxu0 %vm292_vm0, %v268_v39  ;;  %1679 = vmatprep.subr.mxu1 %v648_v47 }
  0x36   : > { %1680 = vmatpush3.msra.mxu1 %v648_v47  ;;  %1733 = vmatprep.subr.mxu0 %v939_v50 }
  0x37   : > { %1651 = vmatmul.mubr.msk.f32.gmra.mxu1 %vm292_vm0, %v284_v44  ;;  %1681 = vmatprep.subr.mxu1 %v647_v48 }
  0x38   : > { %1682 = vmatpush3.msra.mxu1 %v647_v48  ;;  %1734 = vmatpush3.msra.mxu0 %v939_v50 }
  0x39   : > { %1683 = vmatprep.subr.mxu1 %v646_v49  ;;  %1735 = vmatprep.subr.mxu0 %v938_v51 }
  0x3a   : > { %1684 = vmatpush3.msra.mxu1 %v646_v49  ;;  %1736 = vmatpush3.msra.mxu0 %v938_v51 }
  0x3b   : > { %1737 = vmatprep.subr.mxu0 %v937_v52 }
  0x3c   : > { %1738 = vmatpush3.msra.mxu0 %v937_v52 }
  0x3d   : > { %1739 = vmatprep.subr.mxu0 %v936_v53 }
  0x3e   : > { %1740 = vmatpush3.msra.mxu0 %v936_v53 }
  0x3f   : > { %1741 = vmatprep.subr.mxu0 %v935_v54 }
  0x40   : > { %1742 = vmatpush3.msra.mxu0 %v935_v54 }
  0x41   : > { %1743 = vmatprep.subr.mxu0 %v934_v55 }
  0x42   : > { %1744 = vmatpush3.msra.mxu0 %v934_v55 }
  0x43   : > { %1745 = vmatprep.subr.mxu0 %v933_v56 }
  0x44   : > { %1746 = vmatpush3.msra.mxu0 %v933_v56 }
  0x45   : > { %1747 = vmatprep.subr.mxu0 %v932_v57 }
  0x46   : > { %1748 = vmatpush3.msra.mxu0 %v932_v57 }
  0x47   : > { %1749 = vmatprep.subr.mxu0 %v931_v58 }
  0x48   : > { %1750 = vmatpush3.msra.mxu0 %v931_v58 }
  0x49   : > { %1751 = vmatprep.subr.mxu0 %v930_v59 }
  0x4a   : > { %1752 = vmatpush3.msra.mxu0 %v930_v59 }
  0x4b   : > { %1753 = vmatprep.subr.mxu0 %v929_v60 }
  0x4c   : > { %1754 = vmatpush3.msra.mxu0 %v929_v60 }
  0x4d   : > { %1755 = vmatprep.subr.mxu0 %v928_v61 }
  0x4e   : > { %1756 = vmatpush3.msra.mxu0 %v928_v61 }
  0xd9   : > { %v1607_v63 = vpop.f32.mrf.mxu0 }
  0xda   : > { %v461_v0 = vadd.f32 %v1607_v63, %v2178_v62 }
  0xdb   : > { %v455_v1 = vpop.f32.mrf.mxu0  ;;  %v2182_v5 = vpop.f32.mrf.mxu1 }
  0xdc   : > { %v456_v2 = vadd.f32 %v2178_v62, %v455_v1  ;;  %v615_v6 = vmax.f32 %v461_v0, 0.0  ;;  %v541_v60 = vadd.f32 %v2182_v5, %v2178_v62 }
  0xdd   : > { %v1610_v3 = vpop.f32.mrf.mxu0  ;;  %v535_v10 = vpop.f32.mrf.mxu1 }
  0xde   : > { %v614_v4 = vmax.f32 %v456_v2, 0.0  ;;  %v471_v7 = vadd.f32 %v1610_v3, %v2178_v62  ;;  %v536_v50 = vadd.f32 %v2178_v62, %v535_v10  ;;  %v631_v1 = vmax.f32 %v541_v60, 0.0 }
  0xdf   : > { %v465_v8 = vpop.f32.mrf.mxu0  ;;  %v2186_v13 = vpop.f32.mrf.mxu1 }
  0xe0   : > { %v466_v9 = vadd.f32 %v2178_v62, %v465_v8  ;;  %1685 = vmatprep.mubr.f32.mxu1 %v614_v4  ;;  %v617_v14 = vmax.f32 %v471_v7, 0.0  ;;  %v630_v57 = vmax.f32 %v536_v50, 0.0  ;;  %v551_v2 = vadd.f32 %v2186_v13, %v2178_v62 }
  0xe1   : > { %v1613_v11 = vpop.f32.mrf.mxu0  ;;  %1686 = vmatmul.mubr.f32.vlgmr.msra.gmra.mxu1 %v615_v6  ;;  %v545_v18 = vpop.f32.mrf.mxu1 }
  0xe2   : > { %v616_v12 = vmax.f32 %v466_v9, 0.0  ;;  %v481_v15 = vadd.f32 %v1613_v11, %v2178_v62  ;;  %v546_v58 = vadd.f32 %v2178_v62, %v545_v18  ;;  %v633_v7 = vmax.f32 %v551_v2, 0.0 }
  0xe3   : > { %v475_v16 = vpop.f32.mrf.mxu0  ;;  %v2190_v21 = vpop.f32.mrf.mxu1 }
  0xe4   : > { %v476_v17 = vadd.f32 %v2178_v62, %v475_v16  ;;  %1688 = vmatprep.mubr.f32.mxu1 %v616_v12  ;;  %v619_v22 = vmax.f32 %v481_v15, 0.0  ;;  %v632_v63 = vmax.f32 %v546_v58, 0.0  ;;  %v561_v5 = vadd.f32 %v2190_v21, %v2178_v62 }
  0xe5   : > { %v1616_v19 = vpop.f32.mrf.mxu0  ;;  %1689 = vmatmul.mubr.f32.gmra.mxu1 %v617_v14  ;;  %v555_v26 = vpop.f32.mrf.mxu1 }
  0xe6   : > { %v618_v20 = vmax.f32 %v476_v17, 0.0  ;;  %v491_v23 = vadd.f32 %v1616_v19, %v2178_v62  ;;  %v556_v0 = vadd.f32 %v2178_v62, %v555_v26  ;;  %v635_v11 = vmax.f32 %v561_v5, 0.0 }
  0xe7   : > { %v485_v24 = vpop.f32.mrf.mxu0  ;;  %v1640_v32 = vpop.f32.mrf.mxu1 }
  0xe8   : > { %v486_v25 = vadd.f32 %v2178_v62, %v485_v24  ;;  %1691 = vmatprep.mubr.f32.mxu1 %v618_v20  ;;  %v621_v29 = vmax.f32 %v491_v23, 0.0  ;;  %v634_v4 = vmax.f32 %v556_v0, 0.0  ;;  %v571_v12 = vadd.f32 %v1640_v32, %v2178_v62  ;;  %v927_v32 = vld [vmem:[%s2399_s3 + $0x18] sm:$0xff] }
  0xe9   : > { %v1619_v27 = vpop.f32.mrf.mxu0  ;;  %1692 = vmatmul.mubr.f32.gmra.mxu1 %v619_v22  ;;  %v565_v39 = vpop.f32.mrf.mxu1  ;;  %1757 = vmatprep.subr.mxu0 %v927_v32 }
  0xea   : > { %v620_v28 = vmax.f32 %v486_v25, 0.0  ;;  %v501_v30 = vadd.f32 %v1619_v27, %v2178_v62  ;;  %v566_v6 = vadd.f32 %v2178_v62, %v565_v39  ;;  %v637_v16 = vmax.f32 %v571_v12, 0.0  ;;  %1758 = vmatpush3.msra.mxu0 %v927_v32 }
  0xeb   : > { %v495_v31 = vpop.f32.mrf.mxu0  ;;  %v1643_v46 = vpop.f32.mrf.mxu1 }
  0xec   : > { %v496_v33 = vadd.f32 %v2178_v62, %v495_v31  ;;  %1694 = vmatprep.mubr.f32.mxu1 %v620_v28  ;;  %v623_v36 = vmax.f32 %v501_v30, 0.0  ;;  %v636_v9 = vmax.f32 %v566_v6, 0.0  ;;  %v581_v17 = vadd.f32 %v1643_v46, %v2178_v62 }
  0xed   : > { %v1622_v34 = vpop.f32.mrf.mxu0  ;;  %1695 = vmatmul.mubr.f32.gmra.mxu1 %v621_v29  ;;  %v575_v54 = vpop.f32.mrf.mxu1 }
  0xee   : > { %v622_v35 = vmax.f32 %v496_v33, 0.0  ;;  %v511_v37 = vadd.f32 %v1622_v34, %v2178_v62  ;;  %v576_v10 = vadd.f32 %v2178_v62, %v575_v54  ;;  %v639_v21 = vmax.f32 %v581_v17, 0.0  ;;  %v926_v33 = vld [vmem:[%s2399_s3 + $0x10] sm:$0xff]  ;;  %v924_v34 = vld [vmem:[%s2399_s3] sm:$0xff] }
  0xef   : > { %v505_v38 = vpop.f32.mrf.mxu0  ;;  %v1646_v61 = vpop.f32.mrf.mxu1  ;;  %1759 = vmatprep.subr.mxu0 %v926_v33 }
  0xf0   : > { %v506_v40 = vadd.f32 %v2178_v62, %v505_v38  ;;  %1697 = vmatprep.mubr.f32.mxu1 %v622_v35  ;;  %v625_v43 = vmax.f32 %v511_v37, 0.0  ;;  %v638_v14 = vmax.f32 %v576_v10, 0.0  ;;  %v591_v22 = vadd.f32 %v1646_v61, %v2178_v62  ;;  %1760 = vmatpush3.msra.mxu0 %v926_v33  ;;  %v2236_v35 = vld [vmem:[%s2401_s5 + $0x1] ss:$0 sm:$0xff] }
  0xf1   : > { %v1625_v41 = vpop.f32.mrf.mxu0  ;;  %1698 = vmatmul.mubr.f32.gmra.mxu1 %v623_v36  ;;  %v585_v3 = vpop.f32.mrf.mxu1 }
  0xf2   : > { %v624_v42 = vmax.f32 %v506_v40, 0.0  ;;  %v521_v44 = vadd.f32 %v1625_v41, %v2178_v62  ;;  %v586_v15 = vadd.f32 %v2178_v62, %v585_v3  ;;  %v641_v26 = vmax.f32 %v591_v22, 0.0 }
  0xf3   : > { %v515_v45 = vpop.f32.mrf.mxu0  ;;  %v1649_v8 = vpop.f32.mrf.mxu1 }
  0xf4   : > { %v516_v47 = vadd.f32 %v2178_v62, %v515_v45  ;;  %1700 = vmatprep.mubr.f32.mxu1 %v624_v42  ;;  %v627_v51 = vmax.f32 %v521_v44, 0.0  ;;  %v640_v19 = vmax.f32 %v586_v15, 0.0  ;;  %v601_v27 = vadd.f32 %v1649_v8, %v2178_v62 }
  0xf5   : > { %v1628_v48 = vpop.f32.mrf.mxu0  ;;  %1701 = vmatmul.mubr.f32.gmra.mxu1 %v625_v43  ;;  %v595_v13 = vpop.f32.mrf.mxu1 }
  0xf6   : > { %v626_v49 = vmax.f32 %v516_v47, 0.0  ;;  %v531_v52 = vadd.f32 %v1628_v48, %v2178_v62  ;;  %v596_v20 = vadd.f32 %v2178_v62, %v595_v13  ;;  %v643_v29 = vmax.f32 %v601_v27, 0.0 }
  0xf7   : > { %v525_v53 = vpop.f32.mrf.mxu0  ;;  %v1652_v18 = vpop.f32.mrf.mxu1 }
  0xf8   : > { %v526_v55 = vadd.f32 %v2178_v62, %v525_v53  ;;  %1703 = vmatprep.mubr.f32.mxu1 %v626_v49  ;;  %v629_v59 = vmax.f32 %v531_v52, 0.0  ;;  %v642_v24 = vmax.f32 %v596_v20, 0.0  ;;  %v611_v30 = vadd.f32 %v1652_v18, %v2178_v62 }
  0xf9   : > { %1704 = vmatmul.mubr.f32.gmra.mxu1 %v627_v51  ;;  %v605_v23 = vpop.f32.mrf.mxu1 }
  0xfa   : > { %v628_v56 = vmax.f32 %v526_v55, 0.0  ;;  %v606_v25 = vadd.f32 %v2178_v62, %v605_v23  ;;  %v645_v31 = vmax.f32 %v611_v30, 0.0  ;;  %v925_v62 = vld [vmem:[%s2399_s3 + $0x8] sm:$0xff] }
  0xfb   : > { %1761 = vmatprep.subr.mxu0 %v925_v62 }
  0xfc   : > { %1706 = vmatprep.mubr.f32.mxu1 %v628_v56  ;;  %v644_v28 = vmax.f32 %v606_v25, 0.0  ;;  %1762 = vmatpush3.msra.mxu0 %v925_v62 }
  0xfd   : > { %1707 = vmatmul.mubr.f32.gmra.mxu1 %v629_v59  ;;  %1763 = vmatprep.subr.mxu0 %v924_v34 }
  0xfe   : > { %1709 = vmatprep.mubr.f32.mxu1 %v630_v57  ;;  %1764 = vmatpush3.msra.mxu0 %v924_v34 }
 0x101   : > { %1710 = vmatmul.mubr.f32.gmra.mxu1 %v631_v1 }
 0x102   : > { %1712 = vmatprep.mubr.f32.mxu1 %v632_v63 }
 0x105   : > { %1713 = vmatmul.mubr.f32.gmra.mxu1 %v633_v7 }
 0x106   : > { %1715 = vmatprep.mubr.f32.mxu1 %v634_v4 }
 0x109   : > { %1716 = vmatmul.mubr.f32.gmra.mxu1 %v635_v11 }
 0x10a   : > { %1718 = vmatprep.mubr.f32.mxu1 %v636_v9 }
 0x10d   : > { %1719 = vmatmul.mubr.f32.gmra.mxu1 %v637_v16 }
 0x10e   : > { %1721 = vmatprep.mubr.f32.mxu1 %v638_v14 }
 0x111   : > { %1722 = vmatmul.mubr.f32.gmra.mxu1 %v639_v21 }
 0x112   : > { %1724 = vmatprep.mubr.f32.mxu1 %v640_v19 }
 0x115   : > { %1725 = vmatmul.mubr.f32.gmra.mxu1 %v641_v26 }
 0x116   : > { %1727 = vmatprep.mubr.f32.mxu1 %v642_v24 }
 0x119   : > { %1728 = vmatmul.mubr.f32.gmra.mxu1 %v643_v29 }
 0x11a   : > { %1730 = vmatprep.mubr.f32.mxu1 %v644_v28 }
 0x11d   : > { %1731 = vmatmul.mubr.f32.gmra.mxu1 %v645_v31 }
 0x1a1   : > { %v1687_v36 = vpop.f32.mrf.mxu1 }
 0x1a2   : > { %v739_v37 = vadd.f32 %v1687_v36, %v2236_v35 }
 0x1a3   : > { %v733_v38 = vpop.f32.mrf.mxu1 }
 0x1a4   : > { %v734_v39 = vadd.f32 %v2236_v35, %v733_v38  ;;  %v893_v42 = vmax.f32 %v739_v37, 0.0 }
 0x1a5   : > { %v1690_v40 = vpop.f32.mrf.mxu1 }
 0x1a6   : > { %v892_v41 = vmax.f32 %v734_v39, 0.0  ;;  %v749_v43 = vadd.f32 %v1690_v40, %v2236_v35 }
 0x1a7   : > { %v743_v44 = vpop.f32.mrf.mxu1 }
 0x1a8   : > { %v744_v45 = vadd.f32 %v2236_v35, %v743_v44  ;;  %1765 = vmatprep.mubr.f32.mxu0 %v892_v41  ;;  %v895_v48 = vmax.f32 %v749_v43, 0.0 }
 0x1a9   : > { %v1693_v46 = vpop.f32.mrf.mxu1  ;;  %1766 = vmatmul.mubr.f32.vlgmr.msra.gmra.mxu0 %v893_v42 }
 0x1aa   : > { %v894_v47 = vmax.f32 %v744_v45, 0.0  ;;  %v759_v49 = vadd.f32 %v1693_v46, %v2236_v35 }
 0x1ab   : > { %v753_v50 = vpop.f32.mrf.mxu1 }
 0x1ac   : > { %v754_v51 = vadd.f32 %v2236_v35, %v753_v50  ;;  %1768 = vmatprep.mubr.f32.mxu0 %v894_v47  ;;  %v897_v54 = vmax.f32 %v759_v49, 0.0 }
 0x1ad   : > { %v1696_v52 = vpop.f32.mrf.mxu1  ;;  %1769 = vmatmul.mubr.f32.gmra.mxu0 %v895_v48 }
 0x1ae   : > { %v896_v53 = vmax.f32 %v754_v51, 0.0  ;;  %v769_v55 = vadd.f32 %v1696_v52, %v2236_v35 }
 0x1af   : > { %v763_v56 = vpop.f32.mrf.mxu1 }
 0x1b0   : > { %v764_v57 = vadd.f32 %v2236_v35, %v763_v56  ;;  %1771 = vmatprep.mubr.f32.mxu0 %v896_v53  ;;  %v899_v60 = vmax.f32 %v769_v55, 0.0 }
 0x1b1   : > { %v1699_v58 = vpop.f32.mrf.mxu1  ;;  %1772 = vmatmul.mubr.f32.gmra.mxu0 %v897_v54 }
 0x1b2   : > { %v898_v59 = vmax.f32 %v764_v57, 0.0  ;;  %v779_v61 = vadd.f32 %v1699_v58, %v2236_v35 }
 0x1b3   : > { %v773_v63 = vpop.f32.mrf.mxu1 }
 0x1b4   : > { %v774_v0 = vadd.f32 %v2236_v35, %v773_v63  ;;  %1774 = vmatprep.mubr.f32.mxu0 %v898_v59  ;;  %v901_v3 = vmax.f32 %v779_v61, 0.0 }
 0x1b5   : > { %v1702_v1 = vpop.f32.mrf.mxu1  ;;  %1775 = vmatmul.mubr.f32.gmra.mxu0 %v899_v60 }
 0x1b6   : > { %v900_v2 = vmax.f32 %v774_v0, 0.0  ;;  %v789_v4 = vadd.f32 %v1702_v1, %v2236_v35 }
 0x1b7   : > { %v783_v6 = vpop.f32.mrf.mxu1 }
 0x1b8   : > { %v784_v7 = vadd.f32 %v2236_v35, %v783_v6  ;;  %1777 = vmatprep.mubr.f32.mxu0 %v900_v2  ;;  %v903_v9 = vmax.f32 %v789_v4, 0.0 }
 0x1b9   : > { %v1705_v5 = vpop.f32.mrf.mxu1  ;;  %1778 = vmatmul.mubr.f32.gmra.mxu0 %v901_v3 }
 0x1ba   : > { %v902_v8 = vmax.f32 %v784_v7, 0.0  ;;  %v799_v10 = vadd.f32 %v1705_v5, %v2236_v35  ;;  %v2273_v7 = vld [vmem:[%s2400_s4] sm:$0x1] }
 0x1bb   : > { %v793_v11 = vpop.f32.mrf.mxu1  ;;  %1599 = vmatprep.mubr.f32.mxu1 %v2273_v7 }
 0x1bc   : > { %v794_v12 = vadd.f32 %v2236_v35, %v793_v11  ;;  %1780 = vmatprep.mubr.f32.mxu0 %v902_v8  ;;  %v905_v15 = vmax.f32 %v799_v10, 0.0  ;;  %v1203_v8 = vld [vmem:[%s2401_s5 + $0x3] sm:$0x1] }
 0x1bd   : > { %v1708_v13 = vpop.f32.mrf.mxu1  ;;  %1781 = vmatmul.mubr.f32.gmra.mxu0 %v903_v9  ;;  %v1929_v9 = vmov 0  }
 0x1be   : > { %v904_v14 = vmax.f32 %v794_v12, 0.0  ;;  %v809_v16 = vadd.f32 %v1708_v13, %v2236_v35  ;;  %1858 = vset.pattern.permute.xlu0 %v1929_v9 }
 0x1bf   : > { %v803_v17 = vpop.f32.mrf.mxu1  ;;  %1206 = vperm.xlu0 %1858, %v1203_v8  }
 0x1c0   : > { %v804_v18 = vadd.f32 %v2236_v35, %v803_v17  ;;  %1783 = vmatprep.mubr.f32.mxu0 %v904_v14  ;;  %v907_v21 = vmax.f32 %v809_v16, 0.0 }
 0x1c1   : > { %v1711_v19 = vpop.f32.mrf.mxu1  ;;  %1784 = vmatmul.mubr.f32.gmra.mxu0 %v905_v15 }
 0x1c2   : > { %v906_v20 = vmax.f32 %v804_v18, 0.0  ;;  %v819_v22 = vadd.f32 %v1711_v19, %v2236_v35 }
 0x1c3   : > { %v813_v23 = vpop.f32.mrf.mxu1 }
 0x1c4   : > { %v814_v24 = vadd.f32 %v2236_v35, %v813_v23  ;;  %1786 = vmatprep.mubr.f32.mxu0 %v906_v20  ;;  %v909_v27 = vmax.f32 %v819_v22, 0.0 }
 0x1c5   : > { %v1714_v25 = vpop.f32.mrf.mxu1  ;;  %1787 = vmatmul.mubr.f32.gmra.mxu0 %v907_v21 }
 0x1c6   : > { %v908_v26 = vmax.f32 %v814_v24, 0.0  ;;  %v829_v28 = vadd.f32 %v1714_v25, %v2236_v35 }
 0x1c7   : > { %v823_v29 = vpop.f32.mrf.mxu1 }
 0x1c8   : > { %v824_v30 = vadd.f32 %v2236_v35, %v823_v29  ;;  %1789 = vmatprep.mubr.f32.mxu0 %v908_v26  ;;  %v911_v33 = vmax.f32 %v829_v28, 0.0 }
 0x1c9   : > { %v1717_v31 = vpop.f32.mrf.mxu1  ;;  %1790 = vmatmul.mubr.f32.gmra.mxu0 %v909_v27 }
 0x1ca   : > { %v910_v32 = vmax.f32 %v824_v30, 0.0  ;;  %v839_v62 = vadd.f32 %v1717_v31, %v2236_v35 }
 0x1cb   : > { %v833_v34 = vpop.f32.mrf.mxu1 }
 0x1cc   : > { %v834_v36 = vadd.f32 %v2236_v35, %v833_v34  ;;  %1792 = vmatprep.mubr.f32.mxu0 %v910_v32  ;;  %v913_v39 = vmax.f32 %v839_v62, 0.0 }
 0x1cd   : > { %v1720_v37 = vpop.f32.mrf.mxu1  ;;  %1793 = vmatmul.mubr.f32.gmra.mxu0 %v911_v33 }
 0x1ce   : > { %v912_v38 = vmax.f32 %v834_v36, 0.0  ;;  %v849_v40 = vadd.f32 %v1720_v37, %v2236_v35 }
 0x1cf   : > { %v843_v41 = vpop.f32.mrf.mxu1 }
 0x1d0   : > { %v844_v42 = vadd.f32 %v2236_v35, %v843_v41  ;;  %1795 = vmatprep.mubr.f32.mxu0 %v912_v38  ;;  %v915_v45 = vmax.f32 %v849_v40, 0.0  ;;  %v2312_v38 = vld [vmem:[%s2401_s5 + $0x2] ss:$0 sm:$0xff] }
 0x1d1   : > { %v1723_v43 = vpop.f32.mrf.mxu1  ;;  %1796 = vmatmul.mubr.f32.gmra.mxu0 %v913_v39 }
 0x1d2   : > { %v914_v44 = vmax.f32 %v844_v42, 0.0  ;;  %v859_v46 = vadd.f32 %v1723_v43, %v2236_v35 }
 0x1d3   : > { %v853_v47 = vpop.f32.mrf.mxu1 }
 0x1d4   : > { %v854_v48 = vadd.f32 %v2236_v35, %v853_v47  ;;  %1798 = vmatprep.mubr.f32.mxu0 %v914_v44  ;;  %v917_v51 = vmax.f32 %v859_v46, 0.0 }
 0x1d5   : > { %v1726_v49 = vpop.f32.mrf.mxu1  ;;  %1799 = vmatmul.mubr.f32.gmra.mxu0 %v915_v45 }
 0x1d6   : > { %v916_v50 = vmax.f32 %v854_v48, 0.0  ;;  %v869_v52 = vadd.f32 %v1726_v49, %v2236_v35 }
 0x1d7   : > { %v863_v53 = vpop.f32.mrf.mxu1 }
 0x1d8   : > { %v864_v54 = vadd.f32 %v2236_v35, %v863_v53  ;;  %1801 = vmatprep.mubr.f32.mxu0 %v916_v50  ;;  %v919_v57 = vmax.f32 %v869_v52, 0.0 }
 0x1d9   : > { %v1729_v55 = vpop.f32.mrf.mxu1  ;;  %1802 = vmatmul.mubr.f32.gmra.mxu0 %v917_v51 }
 0x1da   : > { %v918_v56 = vmax.f32 %v864_v54, 0.0  ;;  %v879_v58 = vadd.f32 %v1729_v55, %v2236_v35 }
 0x1db   : > { %v873_v59 = vpop.f32.mrf.mxu1 }
 0x1dc   : > { %v874_v60 = vadd.f32 %v2236_v35, %v873_v59  ;;  %1804 = vmatprep.mubr.f32.mxu0 %v918_v56  ;;  %v921_v0 = vmax.f32 %v879_v58, 0.0 }
 0x1dd   : > { %v1732_v61 = vpop.f32.mrf.mxu1  ;;  %1805 = vmatmul.mubr.f32.gmra.mxu0 %v919_v57 }
 0x1de   : > { %v920_v63 = vmax.f32 %v874_v60, 0.0  ;;  %v889_v1 = vadd.f32 %v1732_v61, %v2236_v35 }
 0x1df   : > { %v883_v2 = vpop.f32.mrf.mxu1 }
 0x1e0   : > { %v884_v3 = vadd.f32 %v2236_v35, %v883_v2  ;;  %1807 = vmatprep.mubr.f32.mxu0 %v920_v63  ;;  %v923_v6 = vmax.f32 %v889_v1, 0.0 }
 0x1e1   : > { %1808 = vmatmul.mubr.f32.gmra.mxu0 %v921_v0 }
 0x1e2   : > { %v922_v4 = vmax.f32 %v884_v3, 0.0 }
 0x1e4   : > { %1810 = vmatprep.mubr.f32.mxu0 %v922_v4 }
 0x1e5   : > { %1811 = vmatmul.mubr.f32.gmra.mxu0 %v923_v6 }
 0x269   : > { %v2276_v5 = vpop.f32.mrf.mxu0 }
 0x26b   : > { %v2281_v35 = vpop.f32.mrf.mxu0 }
 0x26d   : > { %v2283_v10 = vpop.f32.mrf.mxu0 }
 0x26f   : > { %v2285_v11 = vpop.f32.mrf.mxu0 }
 0x271   : > { %v2287_v12 = vpop.f32.mrf.mxu0 }
 0x273   : > { %v2289_v13 = vpop.f32.mrf.mxu0 }
 0x275   : > { %v2291_v14 = vpop.f32.mrf.mxu0 }
 0x277   : > { %v2293_v15 = vpop.f32.mrf.mxu0 }
 0x279   : > { %v1779_v16 = vpop.f32.mrf.mxu0 }
 0x27a   : > { %v1057_v2 = vadd.f32 %v1779_v16, %v2312_v38 }
 0x27b   : > { %v2295_v17 = vpop.f32.mrf.mxu0 }
 0x27c   : > { %v1179_v8 = vmax.f32 %v1057_v2, 0.0  ;;  %v1052_v9 = vadd.f32 %v2312_v38, %v2295_v17 }
 0x27d   : > { %v1782_v18 = vpop.f32.mrf.mxu0 }
 0x27e   : > { %v1067_v57 = vadd.f32 %v1782_v18, %v2312_v38 }
 0x27f   : > { %v1061_v19 = vpop.f32.mrf.mxu0 }
 0x280   : > { %v1181_v61 = vmax.f32 %v1067_v57, 0.0  ;;  %v1062_v63 = vadd.f32 %v2312_v38, %v1061_v19 }
 0x281   : > { %v1785_v20 = vpop.f32.mrf.mxu0 }
 0x282   : > { %v1077_v49 = vadd.f32 %v1785_v20, %v2312_v38  ;;  %v1180_v3 = vmax.f32 %v1062_v63, 0.0  ;;  %v1047_v20 = vadd.f32 %v2291_v14, %v2312_v38 }
 0x283   : > { %v1071_v21 = vpop.f32.mrf.mxu0 }
 0x284   : > { %v1183_v53 = vmax.f32 %v1077_v49, 0.0  ;;  %v1072_v54 = vadd.f32 %v2312_v38, %v1071_v21  ;;  %v1178_v21 = vmax.f32 %v1052_v9, 0.0 }
 0x285   : > { %v1788_v22 = vpop.f32.mrf.mxu0 }
 0x286   : > { %v1087_v39 = vadd.f32 %v1788_v22, %v2312_v38  ;;  %v1182_v58 = vmax.f32 %v1072_v54, 0.0 }
 0x287   : > { %v1081_v23 = vpop.f32.mrf.mxu0 }
 0x288   : > { %v1185_v45 = vmax.f32 %v1087_v39, 0.0  ;;  %v1082_v46 = vadd.f32 %v2312_v38, %v1081_v23  ;;  %v1177_v23 = vmax.f32 %v1047_v20, 0.0 }
 0x289   : > { %v2297_v24 = vpop.f32.mrf.mxu0 }
 0x28a   : > { %v1184_v50 = vmax.f32 %v1082_v46, 0.0  ;;  %v1207_v46 = vpop.permute.xlu0 %1206 }
 0x28b   : > { %v2299_v25 = vpop.f32.mrf.mxu0 }
 0x28d   : > { %v2301_v26 = vpop.f32.mrf.mxu0 }
 0x28f   : > { %v2303_v27 = vpop.f32.mrf.mxu0 }
 0x291   : > { %v2305_v28 = vpop.f32.mrf.mxu0 }
 0x292   : > { %v1117_v17 = vadd.f32 %v2305_v28, %v2312_v38  ;;  %v1107_v28 = vadd.f32 %v2301_v26, %v2312_v38  ;;  %v1097_v26 = vadd.f32 %v2297_v24, %v2312_v38 }
 0x293   : > { %v2307_v29 = vpop.f32.mrf.mxu0 }
 0x294   : > { %v1189_v39 = vmax.f32 %v1107_v28, 0.0 }
 0x295   : > { %v1800_v30 = vpop.f32.mrf.mxu0 }
 0x296   : > { %v1127_v18 = vadd.f32 %v1800_v30, %v2312_v38 }
 0x297   : > { %v1121_v31 = vpop.f32.mrf.mxu0 }
 0x298   : > { %v1193_v16 = vmax.f32 %v1127_v18, 0.0  ;;  %v1122_v22 = vadd.f32 %v2312_v38, %v1121_v31  ;;  %v1112_v31 = vadd.f32 %v2312_v38, %v2307_v29  ;;  %v1102_v29 = vadd.f32 %v2312_v38, %v2303_v27 }
 0x299   : > { %v1803_v32 = vpop.f32.mrf.mxu0  ;;  %v1092_v27 = vadd.f32 %v2312_v38, %v2299_v25 }
 0x29a   : > { %v1137_v0 = vadd.f32 %v1803_v32, %v2312_v38  ;;  %v1042_v32 = vadd.f32 %v2312_v38, %v2293_v15  ;;  %v1192_v30 = vmax.f32 %v1122_v22, 0.0  ;;  %v1032_v15 = vadd.f32 %v2312_v38, %v2289_v13 }
 0x29b   : > { %v1131_v33 = vpop.f32.mrf.mxu0  ;;  %v1022_v13 = vadd.f32 %v2312_v38, %v2285_v11  ;;  %v1012_v11 = vadd.f32 %v2312_v38, %v2281_v35 }
 0x29c   : > { %v1195_v4 = vmax.f32 %v1137_v0, 0.0  ;;  %v1132_v6 = vadd.f32 %v2312_v38, %v1131_v33  ;;  %v1037_v33 = vadd.f32 %v2287_v12, %v2312_v38  ;;  %v1176_v14 = vmax.f32 %v1042_v32, 0.0 }
 0x29d   : > { %v1806_v62 = vpop.f32.mrf.mxu0  ;;  %v1027_v12 = vadd.f32 %v2283_v10, %v2312_v38  ;;  %v1017_v10 = vadd.f32 %v2276_v5, %v2312_v38  ;;  %v1170_v24 = vmax.f32 %v1012_v11, 0.0 }
 0x29e   : > { %v1147_v55 = vadd.f32 %v1806_v62, %v2312_v38  ;;  %v1194_v19 = vmax.f32 %v1132_v6, 0.0  ;;  %v1191_v62 = vmax.f32 %v1117_v17, 0.0 }
 0x29f   : > { %v1141_v34 = vpop.f32.mrf.mxu0 }
 0x2a0   : > { %v1197_v59 = vmax.f32 %v1147_v55, 0.0  ;;  %v1142_v60 = vadd.f32 %v2312_v38, %v1141_v34  ;;  %v1175_v34 = vmax.f32 %v1037_v33, 0.0  ;;  %v1930_v55 = vmov 1966171168  }
 0x2a1   : > { %v1809_v36 = vpop.f32.mrf.mxu0 }
 0x2a2   : > { %v1157_v47 = vadd.f32 %v1809_v36, %v2312_v38  ;;  %v1196_v1 = vmax.f32 %v1142_v60, 0.0  ;;  %v1190_v36 = vmax.f32 %v1112_v31, 0.0 }
 0x2a3   : > { %v1151_v37 = vpop.f32.mrf.mxu0 }
 0x2a4   : > { %v1199_v51 = vmax.f32 %v1157_v47, 0.0  ;;  %v1152_v52 = vadd.f32 %v2312_v38, %v1151_v37  ;;  %v1174_v37 = vmax.f32 %v1032_v15, 0.0 }
 0x2a5   : > { %v1812_v40 = vpop.f32.mrf.mxu0 }
 0x2a6   : > { %v1167_v41 = vadd.f32 %v1812_v40, %v2312_v38  ;;  %v1198_v56 = vmax.f32 %v1152_v52, 0.0  ;;  %v1173_v40 = vmax.f32 %v1027_v12, 0.0 }
 0x2a7   : > { %v1161_v42 = vpop.f32.mrf.mxu0 }
 0x2a8   : > { %v1201_v43 = vmax.f32 %v1167_v41, 0.0  ;;  %v1162_v44 = vadd.f32 %v2312_v38, %v1161_v42  ;;  %v1188_v41 = vmax.f32 %v1102_v29, 0.0  ;;  %v1172_v42 = vmax.f32 %v1022_v13, 0.0 }
 0x2aa   : > { %v1200_v48 = vmax.f32 %v1162_v44, 0.0  ;;  %1567 = vmatprep.subr.mxu1 %v1201_v43  ;;  %v1187_v43 = vmax.f32 %v1097_v26, 0.0  ;;  %v1171_v44 = vmax.f32 %v1017_v10, 0.0 }
 0x2ab   : > { %1568 = vmatpush3.xpose.msra.mxu1 %v1185_v45  ;;  %v1186_v45 = vmax.f32 %v1092_v27, 0.0 }
 0x2ac   : > { %1569 = vmatprep.subr.mxu1 %v1200_v48 }
 0x2af   : > { %1570 = vmatpush3.xpose.msra.mxu1 %v1184_v50 }
 0x2b0   : > { %1571 = vmatprep.subr.mxu1 %v1199_v51 }
 0x2b3   : > { %1572 = vmatpush3.xpose.msra.mxu1 %v1183_v53 }
 0x2b4   : > { %1573 = vmatprep.subr.mxu1 %v1198_v56  ;;  %v1298_v56 = vlaneseq }
 0x2b6   : > { %vm1312_vm1 = vcmp.lt.s32.totalorder %v1298_v56, 256 }
 0x2b7   : > { %1574 = vmatpush3.xpose.msra.mxu1 %v1182_v58  ;;  %v1299_v58 = vshrl.u32 %v1298_v56, 7 }
 0x2b8   : > { %1575 = vmatprep.subr.mxu1 %v1197_v59 }
 0x2bb   : > { %1576 = vmatpush3.xpose.msra.mxu1 %v1181_v61 }
 0x2bc   : > { %1577 = vmatprep.subr.mxu1 %v1196_v1 }
 0x2bf   : > { %1578 = vmatpush3.xpose.msra.mxu1 %v1180_v3 }
 0x2c0   : > { %1579 = vmatprep.subr.mxu1 %v1195_v4 }
 0x2c3   : > { %1580 = vmatpush3.xpose.msra.mxu1 %v1179_v8 }
 0x2c4   : > { %1581 = vmatprep.subr.mxu1 %v1194_v19 }
 0x2c7   : > { %1582 = vmatpush3.xpose.msra.mxu1 %v1178_v21 }
 0x2c8   : > { %1583 = vmatprep.subr.mxu1 %v1193_v16 }
 0x2cb   : > { %1584 = vmatpush3.xpose.msra.mxu1 %v1177_v23 }
 0x2cc   : > { %1585 = vmatprep.subr.mxu1 %v1192_v30 }
 0x2cf   : > { %1586 = vmatpush3.xpose.msra.mxu1 %v1176_v14 }
 0x2d0   : > { %1587 = vmatprep.subr.mxu1 %v1191_v62 }
 0x2d3   : > { %1588 = vmatpush3.xpose.msra.mxu1 %v1175_v34 }
 0x2d4   : > { %1589 = vmatprep.subr.mxu1 %v1190_v36 }
 0x2d7   : > { %1590 = vmatpush3.xpose.msra.mxu1 %v1174_v37 }
 0x2d8   : > { %1591 = vmatprep.subr.mxu1 %v1189_v39 }
 0x2db   : > { %1592 = vmatpush3.xpose.msra.mxu1 %v1173_v40 }
 0x2dc   : > { %1593 = vmatprep.subr.mxu1 %v1188_v41 }
 0x2df   : > { %1594 = vmatpush3.xpose.msra.mxu1 %v1172_v42 }
 0x2e0   : > { %1595 = vmatprep.subr.mxu1 %v1187_v43 }
 0x2e3   : > { %1596 = vmatpush3.xpose.msra.mxu1 %v1171_v44 }
 0x2e4   : > { %1597 = vmatprep.subr.mxu1 %v1186_v45 }
 0x2e7   : > { %1598 = vmatpush3.xpose.msra.mxu1 %v1170_v24 }
 0x2ea   : > { %1600 = vmatmul.mubr.f32.vlgmr.msra.gmra.mxu1 %v2273_v7  ;;  %v1296_v7 = vunpack.c.l.s4 %v1930_v55 }
 0x2ec   : > { %v1297_v57 = vunpack.c.0.s8 %v1296_v7 }
 0x2ee   : > { %v1300_v60 = vsub.s32 %v1297_v57, %v1299_v58 }
 0x3aa   : > { %v1275_v5 = vpop.f32.mrf.mxu1 }
 0x3ab   : > { %v1276_v47 = vadd.f32 %v1275_v5, %v1207_v46 }
 0x3ac   : > { %v1277_v48 = vpop.f32.mrf.mxu1 }
 0x3ad   : > { %v1280_v49 = vsub.f32 0.0, %v1276_v47  ;;  %v1278_v25 = vadd.f32 %v1277_v48, %v1207_v46 }
 0x3af   : > { %v1282_v50 = vmul.f32 1.442695, %v1280_v49  ;;  %v1281_v51 = vsub.f32 0.0, %v1278_v25 }
 0x3b1   : > { %1859 = vpow2.f32 %v1282_v50  ;;  %v1284_v52 = vmul.f32 1.442695, %v1281_v51 }
 0x3b3   : > { %1861 = vpow2.f32 %v1284_v52 }
 0x3be   : > { %v1860_v35 = vpop.eup %1859 }
 0x3bf   : > { %v1286_v38 = vadd.f32 1.0, %v1860_v35 }
 0x3c0   : > { %v1862_v53 = vpop.eup %1861 }
 0x3c1   : > { %v1287_v54 = vadd.f32 1.0, %v1862_v53  ;;  %1863 = vrcp.f32 %v1286_v38 }
 0x3c3   : > { %1865 = vrcp.f32 %v1287_v54 }
 0x3ce   : > { %v1864_v59 = vpop.eup %1863 }
 0x3d0   : > { %v1866_v61 = vpop.eup %1865 }
 0x3d1   : > { %v1294_v63 = vcombine.low %v1864_v59, %v1866_v61 }
 0x3d3   : > { %v1301_v0 = vrot.slane %v1294_v63, %v1300_v60 }
 0x3d5   : > { %v1308_v1 = vrot.slane %v1301_v0, %v1300_v60 }
 0x3d7   : > { %1314 = vst.msk [vmem:[%s245_s25] sm:$0x3] %vm1312_vm1, %v1308_v1 }
 0x3d8   : > { %1880 = shalt.err (!%p1877_p3)
}
 0x3d9   : > { %s1881_s16 = scalar_lea.hbm %s1328_s9, 32  ;;  %s1885_s20 = scalar_lea.hbm %s2402_s6, 64 }
 0x3da   : > { %p1882_p4 = scmp.ne.s32.totalorder %s1328_s9, %s1881_s16  ;;  %p1886_p9 = scmp.lt.s32.totalorder %s1328_s9, %s2402_s6 }
 0x3db   : > { %p1887_p10 = scmp.lt.s32.totalorder %s1885_s20, %s1881_s16 }
 0x3dc   : > { %p1883_p7 = pnand %p1882_p4, %p2002_p5 }
 0x3dd   : > { %p1888_p11 = por %p1887_p10, %p1886_p9 }
 0x3de   : > { %p1884_p8 = pneg %p1883_p7 }
 0x3e0   : > { %p1889_p12 = pnand %p1888_p11, %p1884_p8 }
 0x3e2   : > { %1892 = shalt.err (!%p1889_p12)
}
 0x3e3   : > { %1817 = dma.vmem_to_hbm [thread:$0]  (%p2002_p5), %s1331_s26, 32, %s1328_s9, %s1316_s10  }
 0x3e4 PF: > { %p1823_p13 = scmp.ge.s32.totalorder %s1927_s24, 2  ;;  %s1342_s25 = sand.u32 1, %s1915_s21  }
 0x3e5   : > { %s1343_s28 = scalar_lea.sflag [#allocation3], %s1342_s25 }
 0x3e6   : > { %p1820_p0 = pnand %p1823_p13, %p2006_p6 }
 0x3e8   : > { %p1821_p1 = pneg %p1820_p0 }
 0x3ea   : > { %1910 = dma.done.wait (%p1821_p1), %s1343_s28, 32  }
 0x3eb   : > { %1912 = vsyncadd (%p1821_p1), %s1343_s28, 4294967264  ;;  %p16_p2 = scmp.ge.s32.totalorder %s1990_s27, 4   ;;  %s2405_s21 = smov %s1919_s22 }
 0x3ec   : > { %s2406_s22 = smov %s1923_s23  ;;  %s2407_s23 = smov %s2000_s30 }
 0x3ed   : > { %s2408_s24 = smov %s1990_s27  ;;  %18 = sbr.rel (!%p16_p2) target bundleno = 3 (0x3), region = 79 }
 0x3f2   :  { %1348 = vsyncpa [#allocation3], 1 }
 0x3f3   :  { %1350 = vsyncpa [#allocation3 + $0x1], 1 }

</bundles_post_ra>
